<compile_context>
chip_gen: v6e
topology: v6e:2x2x1
jax: 0.10.0
libtpu: 0.0.40
codegen_flags: <defaults>
</compile_context>

<pallas_src>
import functools

import jax
import jax.numpy as jnp
from jax.experimental import pallas as pl
from jax.experimental.pallas import tpu as pltpu

# Module hyper-parameters (defaults of the PyTorch module).
S = 32.0
M = 0.35
T = 0.2
EPS = 1e-12          # F.normalize eps
NEG = -1e30          # filler logit for padded (non-existent) classes


def _make_kernel(*, block_c, num_classes, needs_mask, with_logits):
    def kernel(x_ref, wt_ref, wl_ref, lbl_ref, *refs):
        if with_logits:
            logits_ref, lse_ref, gt_out_ref, xn_ref, gt_ref, m_ref, l_ref = refs
        else:
            lse_ref, gt_out_ref, xn_ref, gt_ref, m_ref, l_ref = refs

        c = pl.program_id(1)

        @pl.when(c == 0)
        def _init():
            # Normalize the batch tile once per batch tile; keep a bf16 copy in
            # VMEM scratch as the MXU feed.
            x = x_ref[...]
            x_inv = jax.lax.rsqrt(
                jnp.maximum(jnp.sum(x * x, axis=1, keepdims=True), EPS * EPS))
            xn = x * x_inv                                   # f32, only lives here
            xn_ref[...] = xn.astype(jnp.bfloat16)
            # True-class cosine in full f32 from the gathered, pre-normalized
            # label rows of the weight.
            gt_ref[...] = jnp.clip(
                jnp.sum(xn * wl_ref[...], axis=1, keepdims=True), -1.0, 1.0)
            # Online-logsumexp state.
            m_ref[...] = jnp.full_like(m_ref, -jnp.inf)
            l_ref[...] = jnp.zeros_like(l_ref)

        # (bt, block_c) cosine tile: bf16 operands, f32 MXU accumulate.
        cos = jnp.dot(xn_ref[...], wt_ref[...],
                      preferred_element_type=jnp.float32)
        cos = jnp.clip(cos, -1.0, 1.0)

        gt = gt_ref[...]                                      # (bt, 1) f32
        thr = gt - M                                          # final_gt (easy_margin=False)
        col = jax.lax.broadcasted_iota(jnp.int32, cos.shape, 1) + c * block_c
        onehot = col == lbl_ref[...]
        hard = (T + 1.0) * cos + T                            # MV-AM re-weighting
        logits = jnp.where(onehot, thr, jnp.where(cos > thr, hard, cos)) * S
        if needs_mask:          # only compiled when C % block_c != 0
            logits = jnp.where(col < num_classes, logits, NEG)
        if with_logits:
            logits_ref[...] = logits.astype(logits_ref.dtype)

        # Fused online logsumexp over the class tiles.
        m_prev = m_ref[...]
        m_new = jnp.maximum(m_prev, jnp.max(logits, axis=1, keepdims=True))
        l_ref[...] = (jnp.exp(m_prev - m_new) * l_ref[...]
                      + jnp.sum(jnp.exp(logits - m_new), axis=1, keepdims=True))
        m_ref[...] = m_new

        @pl.when(c == pl.num_programs(1) - 1)
        def _finalize():
            lse_ref[...] = m_ref[...] + jnp.log(l_ref[...])
            gt_out_ref[...] = gt_ref[...]

    return kernel


def svx_logits(x, weight, label, *, block_c=512, return_logits=True):
    """Returns (scaled logits (B, C) f32 or None, logsumexp (B,) f32, gt (B,) f32)."""
    B, D = x.shape
    C, D2 = weight.shape
    assert D == D2
    x = x.astype(jnp.float32)
    weight = weight.astype(jnp.float32)
    label = label.astype(jnp.int32)

    # Class tile: multiple of 128, clamped so a single tile never exceeds the
    # padded class range.
    block_c = max(128, (block_c // 128) * 128)
    block_c = min(block_c, pl.cdiv(C, 128) * 128)
    d_pad = pl.cdiv(D, 128) * 128           # zero-pad feature dim (inert for dot)
    c_pad = pl.cdiv(C, block_c) * block_c   # pad class dim to whole tiles

    # Batch tile: aim for >=2 tiles (v7x megacore) while staying sublane-aligned.
    if B >= 512:
        bt = 256
    elif B >= 256:
        bt = 128
    elif B >= 16:
        bt = min(128, max(8, (B // 2) // 8 * 8))
    else:
        bt = B
    b_pad = pl.cdiv(B, bt) * bt

    # Weight rows L2-normalized ONCE in XLA (f32), then cast to bf16 for HBM/MXU.
    w_inv = jax.lax.rsqrt(
        jnp.maximum(jnp.sum(weight * weight, axis=1, keepdims=True), EPS * EPS))
    wn = weight * w_inv                                        # (C, D) f32

    lbl = jnp.pad(label, (0, b_pad - B))
    xp = jnp.pad(x, ((0, b_pad - B), (0, d_pad - D)))          # (Bp, Dp) f32
    wl = jnp.pad(jnp.take(wn, lbl, axis=0),
                 ((0, 0), (0, d_pad - D)))                     # (Bp, Dp) f32, normalized label rows
    wt = jnp.pad(wn.T, ((0, d_pad - D), (0, c_pad - C))
                 ).astype(jnp.bfloat16)                        # (Dp, Cp) bf16, lane-dense
    lbl2d = lbl.reshape(b_pad, 1)

    grid = (b_pad // bt, c_pad // block_c)
    needs_mask = (c_pad != C)
    kernel = _make_kernel(block_c=block_c, num_classes=C,
                          needs_mask=needs_mask, with_logits=return_logits)

    out_shape = []
    out_specs = []
    if return_logits:
        out_shape.append(jax.ShapeDtypeStruct((b_pad, c_pad), jnp.float32))
        out_specs.append(pl.BlockSpec((bt, block_c), lambda b, c: (b, c)))
    out_shape += [jax.ShapeDtypeStruct((b_pad, 1), jnp.float32),   # logsumexp
                  jax.ShapeDtypeStruct((b_pad, 1), jnp.float32)]   # gt
    out_specs += [pl.BlockSpec((bt, 1), lambda b, c: (b, 0)),
                  pl.BlockSpec((bt, 1), lambda b, c: (b, 0))]

    outs = pl.pallas_call(
        kernel,
        out_shape=tuple(out_shape),
        grid_spec=pltpu.PrefetchScalarGridSpec(
            num_scalar_prefetch=0,
            grid=grid,
            in_specs=[
                pl.BlockSpec((bt, d_pad), lambda b, c: (b, 0)),        # x
                pl.BlockSpec((d_pad, block_c), lambda b, c: (0, c)),   # normalized W^T tile (bf16)
                pl.BlockSpec((bt, d_pad), lambda b, c: (b, 0)),        # normalized W[label]
                pl.BlockSpec((bt, 1), lambda b, c: (b, 0)),            # label
            ],
            out_specs=tuple(out_specs),
            scratch_shapes=[
                pltpu.VMEM((bt, d_pad), jnp.bfloat16),  # normalized x (MXU feed)
                pltpu.VMEM((bt, 1), jnp.float32),       # gt
                pltpu.VMEM((bt, 1), jnp.float32),       # running max
                pltpu.VMEM((bt, 1), jnp.float32),       # running sum-exp
            ],
        ),
        compiler_params=pltpu.CompilerParams(
            dimension_semantics=("parallel", "arbitrary"),
        ),
    )(xp, wt, wl, lbl2d)

    if return_logits:
        logits, lse, gt = outs
        return logits[:B, :C], lse[:B, 0], gt[:B, 0]
    lse, gt = outs
    return None, lse[:B, 0], gt[:B, 0]


def svx_softmax_forward(x, weight, label, *, return_logits=False, block_c=512):
    logits, lse, gt = svx_logits(x, weight, label, block_c=block_c,
                                 return_logits=return_logits)
    # TODO(synk): SoftmaxLossMixin._calc_loss is not provided; assume standard
    # mean softmax cross-entropy.  The true-class logit is s*(gt - m) by
    # construction (easy_margin=False), so the fused in-kernel logsumexp gives
    # the loss without re-reading the (B, C) logits from HBM.
    loss = jnp.mean(lse - S * (gt - M))
    if return_logits:
        return loss, logits, lse, gt
    return loss, lse, gt


if __name__ == "__main__":
    key = jax.random.PRNGKey(0)
    k_x, k_w, k_l = jax.random.split(key, 3)

    batch = 8
    in_features = 64      # padded to 128 inside the wrapper
    out_features = 1000   # padded to 1024 -> two 512-wide class tiles

    x = jax.random.normal(k_x, (batch, in_features), dtype=jnp.float32)
    # Deterministic stand-in for the torch uniform(-1,1).renorm_().mul_() init;
    # rows are re-normalized in the forward pass anyway.
    weight = jax.random.uniform(k_w, (out_features, in_features),
                                dtype=jnp.float32, minval=-1.0, maxval=1.0)
    label = jax.random.randint(k_l, (batch,), 0, out_features, dtype=jnp.int32)

    # Production (loss-only) path: no (B, C) logits writeback.
    loss_only, lse_only, gt_only = jax.jit(svx_softmax_forward)(x, weight, label)
    # Debug path with logits materialized, used for the parity check below.
    loss, logits, lse, gt = jax.jit(
        functools.partial(svx_softmax_forward, return_logits=True))(x, weight, label)
    jax.block_until_ready((loss_only, loss, logits, lse, gt))

    # Pure-JAX reference replicating the kernel math (rsqrt-eps normalization,
    # pre-normalized bf16 weight fed to the MXU for cos, f32 gt).
    x_inv = jax.lax.rsqrt(
        jnp.maximum(jnp.sum(x * x, axis=1, keepdims=True), EPS * EPS))
    xn = x * x_inv
    w_inv = jax.lax.rsqrt(
        jnp.maximum(jnp.sum(weight * weight, axis=1, keepdims=True), EPS * EPS))
    wn = weight * w_inv
    cos_ref = jnp.clip(
        jnp.dot(xn.astype(jnp.bfloat16), wn.T.astype(jnp.bfloat16),
                preferred_element_type=jnp.float32), -1.0, 1.0)
    gt_ref = jnp.clip(jnp.sum(xn * wn[label], axis=1, keepdims=True), -1.0, 1.0)
    thr_ref = gt_ref - M
    onehot_ref = jax.nn.one_hot(label, out_features, dtype=bool)
    logits_ref = jnp.where(
        onehot_ref, thr_ref,
        jnp.where(cos_ref > thr_ref, (T + 1.0) * cos_ref + T, cos_ref)) * S
    lse_ref = jax.scipy.special.logsumexp(logits_ref, axis=1)

    # Entries sitting within bf16 noise of the MV-AM threshold may legitimately
    # land on the other side of the hard-example mask; exclude those.
    safe = jnp.abs(cos_ref - thr_ref) > 2e-3
    err = jnp.where(safe, jnp.abs(logits - logits_ref), 0.0)
    assert float(jnp.max(err)) < 5e-2
    assert float(jnp.max(jnp.abs(gt - gt_ref[:, 0]))) < 1e-4
    row_safe = jnp.all(safe, axis=1)
    lse_err = jnp.where(row_safe, jnp.abs(lse - lse_ref), 0.0)
    assert float(jnp.max(lse_err)) < 5e-2
    # Loss-only path must match the logits-producing path exactly.
    assert abs(float(loss_only) - float(loss)) < 1e-5
    assert float(jnp.max(jnp.abs(lse_only - lse))) < 1e-5
    assert float(jnp.max(jnp.abs(gt_only - gt))) < 1e-6

    print("KERNEL_OK")
</pallas_src>

<mosaic_0001>
module attributes {stable_mosaic.version = 11 : i64} {
  func.func @kernel(%arg0: i32, %arg1: i32, %arg2: memref<8x128xf32, #tpu.memory_space<vmem>>, %arg3: memref<128x512xbf16, #tpu.memory_space<vmem>>, %arg4: memref<8x128xf32, #tpu.memory_space<vmem>>, %arg5: memref<8x1xi32, #tpu.memory_space<vmem>>, %arg6: memref<8x1xf32, #tpu.memory_space<vmem>>, %arg7: memref<8x1xf32, #tpu.memory_space<vmem>>, %arg8: memref<8x128xbf16, #tpu.memory_space<vmem>>, %arg9: memref<8x1xf32, #tpu.memory_space<vmem>>, %arg10: memref<8x1xf32, #tpu.memory_space<vmem>>, %arg11: memref<8x1xf32, #tpu.memory_space<vmem>>) attributes {dimension_semantics = [#tpu.dimension_semantics<parallel>, #tpu.dimension_semantics<arbitrary>], iteration_bounds = array<i64: 1, 2>, scalar_prefetch = 0 : i64, scratch_operands = 4 : i64, tpu.core_type = #tpu.core_type<tc>, window_params = [{transform_indices = @transform_0, window_bounds = array<i64: 8, 128>}, {transform_indices = @transform_1, window_bounds = array<i64: 128, 512>}, {transform_indices = @transform_2, window_bounds = array<i64: 8, 128>}, {transform_indices = @transform_3, window_bounds = array<i64: 8, 1>}, {transform_indices = @transform_4, window_bounds = array<i64: 8, 1>}, {transform_indices = @transform_5, window_bounds = array<i64: 8, 1>}]} {
    %c0_i32 = arith.constant 0 : i32
    %0 = arith.cmpi eq, %arg1, %c0_i32 : i32
    %1 = arith.extui %0 : i1 to i32
    %c0_i32_0 = arith.constant 0 : i32
    %2 = arith.cmpi ne, %1, %c0_i32_0 : i32
    scf.if %2 {
      %c0_26 = arith.constant 0 : index
      %c0_27 = arith.constant 0 : index
      %55 = vector.load %arg2[%c0_26, %c0_27] : memref<8x128xf32, #tpu.memory_space<vmem>>, vector<8x128xf32>
      %56 = arith.mulf %55, %55 : vector<8x128xf32>
      %cst_28 = arith.constant dense<0.000000e+00> : vector<8xf32>
      %57 = vector.multi_reduction <add>, %56, %cst_28 [1] : vector<8x128xf32> to vector<8xf32>
      %58 = vector.shape_cast %57 : vector<8xf32> to vector<8x1xf32>
      %cst_29 = arith.constant 1.000000e-24 : f32
      %59 = vector.broadcast %cst_29 : f32 to vector<8x1xf32>
      %60 = arith.maximumf %58, %59 : vector<8x1xf32>
      %61 = math.rsqrt %60 : vector<8x1xf32>
      %62 = vector.broadcast %61 : vector<8x1xf32> to vector<8x128xf32>
      %63 = arith.mulf %55, %62 : vector<8x128xf32>
      %64 = arith.truncf %63 : vector<8x128xf32> to vector<8x128xbf16>
      %c0_30 = arith.constant 0 : index
      %c0_31 = arith.constant 0 : index
      %65 = vector.load %arg8[%c0_30, %c0_31] : memref<8x128xbf16, #tpu.memory_space<vmem>>, vector<8x128xbf16>
      tpu.vector_store %arg8[%c0_30, %c0_31], %64 {strides = array<i32>} : memref<8x128xbf16, #tpu.memory_space<vmem>>, vector<8x128xbf16>,
      %c0_32 = arith.constant 0 : index
      %c0_33 = arith.constant 0 : index
      %66 = vector.load %arg4[%c0_32, %c0_33] : memref<8x128xf32, #tpu.memory_space<vmem>>, vector<8x128xf32>
      %67 = arith.mulf %63, %66 : vector<8x128xf32>
      %cst_34 = arith.constant dense<0.000000e+00> : vector<8xf32>
      %68 = vector.multi_reduction <add>, %67, %cst_34 [1] : vector<8x128xf32> to vector<8xf32>
      %69 = vector.shape_cast %68 : vector<8xf32> to vector<8x1xf32>
      %cst_35 = arith.constant -1.000000e+00 : f32
      %cst_36 = arith.constant 1.000000e+00 : f32
      %70 = vector.broadcast %cst_35 : f32 to vector<8x1xf32>
      %71 = arith.maximumf %70, %69 : vector<8x1xf32>
      %72 = vector.broadcast %cst_36 : f32 to vector<8x1xf32>
      %73 = arith.minimumf %72, %71 : vector<8x1xf32>
      %c0_37 = arith.constant 0 : index
      %c0_38 = arith.constant 0 : index
      %74 = vector.load %arg9[%c0_37, %c0_38] : memref<8x1xf32, #tpu.memory_space<vmem>>, vector<8x1xf32>
      tpu.vector_store %arg9[%c0_37, %c0_38], %73 {strides = array<i32>} : memref<8x1xf32, #tpu.memory_space<vmem>>, vector<8x1xf32>,
      %cst_39 = arith.constant 0xFF800000 : f32
      %75 = vector.broadcast %cst_39 : f32 to vector<8x1xf32>
      %c0_40 = arith.constant 0 : index
      %c0_41 = arith.constant 0 : index
      %76 = vector.load %arg10[%c0_40, %c0_41] : memref<8x1xf32, #tpu.memory_space<vmem>>, vector<8x1xf32>
      tpu.vector_store %arg10[%c0_40, %c0_41], %75 {strides = array<i32>} : memref<8x1xf32, #tpu.memory_space<vmem>>, vector<8x1xf32>,
      %cst_42 = arith.constant 0.000000e+00 : f32
      %77 = vector.broadcast %cst_42 : f32 to vector<8x1xf32>
      %c0_43 = arith.constant 0 : index
      %c0_44 = arith.constant 0 : index
      %78 = vector.load %arg11[%c0_43, %c0_44] : memref<8x1xf32, #tpu.memory_space<vmem>>, vector<8x1xf32>
      tpu.vector_store %arg11[%c0_43, %c0_44], %77 {strides = array<i32>} : memref<8x1xf32, #tpu.memory_space<vmem>>, vector<8x1xf32>,
    } else {
    }
    %c0 = arith.constant 0 : index
    %c0_1 = arith.constant 0 : index
    %3 = vector.load %arg8[%c0, %c0_1] : memref<8x128xbf16, #tpu.memory_space<vmem>>, vector<8x128xbf16>
    %c0_2 = arith.constant 0 : index
    %c0_3 = arith.constant 0 : index
    %4 = vector.load %arg3[%c0_2, %c0_3] : memref<128x512xbf16, #tpu.memory_space<vmem>>, vector<128x512xbf16>
    %cst = arith.constant dense<0.000000e+00> : vector<8x512xf32>
    %5 = tpu.matmul %3, %4, %cst {dimension_numbers = #tpu.dot_dimension_numbers<[1], [0], [0], [1], [0, 0, 1, 1], [], []>} : vector<8x128xbf16>, vector<128x512xbf16>, vector<8x512xf32> -> vector<8x512xf32>
    %cst_4 = arith.constant -1.000000e+00 : f32
    %cst_5 = arith.constant 1.000000e+00 : f32
    %6 = vector.broadcast %cst_4 : f32 to vector<8x512xf32>
    %7 = arith.maximumf %6, %5 : vector<8x512xf32>
    %8 = vector.broadcast %cst_5 : f32 to vector<8x512xf32>
    %9 = arith.minimumf %8, %7 : vector<8x512xf32>
    %c0_6 = arith.constant 0 : index
    %c0_7 = arith.constant 0 : index
    %10 = vector.load %arg9[%c0_6, %c0_7] : memref<8x1xf32, #tpu.memory_space<vmem>>, vector<8x1xf32>
    %cst_8 = arith.constant 3.500000e-01 : f32
    %11 = vector.broadcast %cst_8 : f32 to vector<8x1xf32>
    %12 = arith.subf %10, %11 : vector<8x1xf32>
    %13 = tpu.iota {dimensions = array<i32: 1>} : vector<8x512xi32>
    %c512_i32 = arith.constant 512 : i32
    %14 = arith.muli %arg1, %c512_i32 : i32
    %15 = vector.broadcast %14 : i32 to vector<8x512xi32>
    %16 = arith.addi %13, %15 : vector<8x512xi32>
    %c0_9 = arith.constant 0 : index
    %c0_10 = arith.constant 0 : index
    %17 = vector.load %arg5[%c0_9, %c0_10] : memref<8x1xi32, #tpu.memory_space<vmem>>, vector<8x1xi32>
    %18 = vector.broadcast %17 : vector<8x1xi32> to vector<8x512xi32>
    %19 = arith.cmpi eq, %16, %18 : vector<8x512xi32>
    %cst_11 = arith.constant 1.200000e+00 : f32
    %20 = vector.broadcast %cst_11 : f32 to vector<8x512xf32>
    %21 = arith.mulf %20, %9 : vector<8x512xf32>
    %cst_12 = arith.constant 2.000000e-01 : f32
    %22 = vector.broadcast %cst_12 : f32 to vector<8x512xf32>
    %23 = arith.addf %21, %22 : vector<8x512xf32>
    %24 = vector.broadcast %12 : vector<8x1xf32> to vector<8x512xf32>
    %25 = arith.cmpf ogt, %9, %24 : vector<8x512xf32>
    %26 = arith.select %25, %23, %9 : vector<8x512xi1>, vector<8x512xf32>
    %27 = vector.shape_cast %12 : vector<8x1xf32> to vector<8x1xf32>
    %28 = vector.broadcast %27 : vector<8x1xf32> to vector<8x512xf32>
    %29 = arith.select %19, %28, %26 : vector<8x512xi1>, vector<8x512xf32>
    %cst_13 = arith.constant 3.200000e+01 : f32
    %30 = vector.broadcast %cst_13 : f32 to vector<8x512xf32>
    %31 = arith.mulf %29, %30 : vector<8x512xf32>
    %c1000_i32 = arith.constant 1000 : i32
    %32 = vector.broadcast %c1000_i32 : i32 to vector<8x512xi32>
    %33 = arith.cmpi slt, %16, %32 : vector<8x512xi32>
    %cst_14 = arith.constant -1.000000e+30 : f32
    %34 = vector.broadcast %cst_14 : f32 to vector<8x512xf32>
    %35 = arith.select %33, %31, %34 : vector<8x512xi1>, vector<8x512xf32>
    %c0_15 = arith.constant 0 : index
    %c0_16 = arith.constant 0 : index
    %36 = vector.load %arg10[%c0_15, %c0_16] : memref<8x1xf32, #tpu.memory_space<vmem>>, vector<8x1xf32>
    %cst_17 = arith.constant dense<0xFF800000> : vector<8xf32>
    %37 = vector.multi_reduction <maximumf>, %35, %cst_17 [1] : vector<8x512xf32> to vector<8xf32>
    %38 = vector.shape_cast %37 : vector<8xf32> to vector<8x1xf32>
    %39 = arith.maximumf %36, %38 : vector<8x1xf32>
    %40 = arith.subf %36, %39 : vector<8x1xf32>
    %41 = math.exp %40 : vector<8x1xf32>
    %c0_18 = arith.constant 0 : index
    %c0_19 = arith.constant 0 : index
    %42 = vector.load %arg11[%c0_18, %c0_19] : memref<8x1xf32, #tpu.memory_space<vmem>>, vector<8x1xf32>
    %43 = arith.mulf %41, %42 : vector<8x1xf32>
    %44 = vector.broadcast %39 : vector<8x1xf32> to vector<8x512xf32>
    %45 = arith.subf %35, %44 : vector<8x512xf32>
    %46 = math.exp %45 : vector<8x512xf32>
    %cst_20 = arith.constant dense<0.000000e+00> : vector<8xf32>
    %47 = vector.multi_reduction <add>, %46, %cst_20 [1] : vector<8x512xf32> to vector<8xf32>
    %48 = vector.shape_cast %47 : vector<8xf32> to vector<8x1xf32>
    %49 = arith.addf %43, %48 : vector<8x1xf32>
    %c0_21 = arith.constant 0 : index
    %c0_22 = arith.constant 0 : index
    %50 = vector.load %arg11[%c0_21, %c0_22] : memref<8x1xf32, #tpu.memory_space<vmem>>, vector<8x1xf32>
    tpu.vector_store %arg11[%c0_21, %c0_22], %49 {strides = array<i32>} : memref<8x1xf32, #tpu.memory_space<vmem>>, vector<8x1xf32>,
    %c0_23 = arith.constant 0 : index
    %c0_24 = arith.constant 0 : index
    %51 = vector.load %arg10[%c0_23, %c0_24] : memref<8x1xf32, #tpu.memory_space<vmem>>, vector<8x1xf32>
    tpu.vector_store %arg10[%c0_23, %c0_24], %39 {strides = array<i32>} : memref<8x1xf32, #tpu.memory_space<vmem>>, vector<8x1xf32>,
    %c1_i32 = arith.constant 1 : i32
    %52 = arith.cmpi eq, %arg1, %c1_i32 : i32
    %53 = arith.extui %52 : i1 to i32
    %c0_i32_25 = arith.constant 0 : i32
    %54 = arith.cmpi ne, %53, %c0_i32_25 : i32
    scf.if %54 {
      %c0_26 = arith.constant 0 : index
      %c0_27 = arith.constant 0 : index
      %55 = vector.load %arg10[%c0_26, %c0_27] : memref<8x1xf32, #tpu.memory_space<vmem>>, vector<8x1xf32>
      %c0_28 = arith.constant 0 : index
      %c0_29 = arith.constant 0 : index
      %56 = vector.load %arg11[%c0_28, %c0_29] : memref<8x1xf32, #tpu.memory_space<vmem>>, vector<8x1xf32>
      %57 = math.log %56 : vector<8x1xf32>
      %58 = arith.addf %55, %57 : vector<8x1xf32>
      %c0_30 = arith.constant 0 : index
      %c0_31 = arith.constant 0 : index
      %59 = vector.load %arg6[%c0_30, %c0_31] : memref<8x1xf32, #tpu.memory_space<vmem>>, vector<8x1xf32>
      tpu.vector_store %arg6[%c0_30, %c0_31], %58 {strides = array<i32>} : memref<8x1xf32, #tpu.memory_space<vmem>>, vector<8x1xf32>,
      %c0_32 = arith.constant 0 : index
      %c0_33 = arith.constant 0 : index
      %60 = vector.load %arg9[%c0_32, %c0_33] : memref<8x1xf32, #tpu.memory_space<vmem>>, vector<8x1xf32>
      %c0_34 = arith.constant 0 : index
      %c0_35 = arith.constant 0 : index
      %61 = vector.load %arg7[%c0_34, %c0_35] : memref<8x1xf32, #tpu.memory_space<vmem>>, vector<8x1xf32>
      tpu.vector_store %arg7[%c0_34, %c0_35], %60 {strides = array<i32>} : memref<8x1xf32, #tpu.memory_space<vmem>>, vector<8x1xf32>,
    } else {
    }
    return
  }
  func.func @transform_0(%arg0: i32, %arg1: i32) -> (i32, i32) {
    %c0_i32 = arith.constant 0 : i32
    %c0_i32_0 = arith.constant 0 : i32
    return %arg0, %c0_i32 : i32, i32
  }
  func.func @transform_1(%arg0: i32, %arg1: i32) -> (i32, i32) {
    %c0_i32 = arith.constant 0 : i32
    %c0_i32_0 = arith.constant 0 : i32
    return %c0_i32, %arg1 : i32, i32
  }
  func.func @transform_2(%arg0: i32, %arg1: i32) -> (i32, i32) {
    %c0_i32 = arith.constant 0 : i32
    %c0_i32_0 = arith.constant 0 : i32
    return %arg0, %c0_i32 : i32, i32
  }
  func.func @transform_3(%arg0: i32, %arg1: i32) -> (i32, i32) {
    %c0_i32 = arith.constant 0 : i32
    %c0_i32_0 = arith.constant 0 : i32
    return %arg0, %c0_i32 : i32, i32
  }
  func.func @transform_4(%arg0: i32, %arg1: i32) -> (i32, i32) {
    %c0_i32 = arith.constant 0 : i32
    %c0_i32_0 = arith.constant 0 : i32
    return %arg0, %c0_i32 : i32, i32
  }
  func.func @transform_5(%arg0: i32, %arg1: i32) -> (i32, i32) {
    %c0_i32 = arith.constant 0 : i32
    %c0_i32_0 = arith.constant 0 : i32
    return %arg0, %c0_i32 : i32, i32
  }
}

</mosaic_0001>

<bundles_post_ra>
// kernel: svx_softmax_forward.1
= control target key start
LH: loop header
LB: loop body
LE: loop exit
PB: predicated region body
PF: predicated region fallthrough
CT: control target
= control target key end

     0   :  { %s1170_s18 = smov 0   ;;  %s1172_s19 = smov 0   ;;  %s1360_s0 = inlined_call_operand.vmem [shape: f32[8,128], index: 0, kind: input, shape index: {}]   ;;  %s1361_s1 = inlined_call_operand.vmem [shape: bf16[128,1024], index: 1, kind: input, shape index: {}]   ;;  %s1362_s2 = inlined_call_operand.vmem [shape: f32[8,128], index: 2, kind: input, shape index: {}]   ;;  %s1363_s3 = inlined_call_operand.vmem [shape: s32[8,1], index: 3, kind: input, shape index: {}]   ;;  %s1364_s4 = inlined_call_operand.vmem [shape: f32[8,1], index: 4, kind: output, shape index: {0}]   ;;  %s1365_s5 = inlined_call_operand.vmem [shape: f32[8,1], index: 5, kind: output, shape index: {1}]  }
   0x1   :  { %s1174_s20 = smov 0   ;;  %s1176_s21 = smov 0  }
   0x2   :  { %s1178_s22 = smov 0  }
   0x3 LB: > { %s25_s23 = sadd.s32 1, %s1131_s21  ;;  %p68_p1 = scmp.ne.s32.totalorder %s1123_s19, %s1119_s18  ;;  %s1135_s22 = sphi %s1178_s22, %s16_s22   ;;  %s1131_s21 = sphi %s1176_s21, %s1369_s21   ;;  %s1127_s20 = sphi %s1174_s20, %s1368_s20   ;;  %s1123_s19 = sphi %s1172_s19, %s1367_s19   ;;  %s1119_s18 = sphi %s1170_s18, %s1366_s18  }
   0x4   : > { %p26_p0 = scmp.ge.s32.totalorder %s25_s23, 2  ;;  %p69_p2 = scmp.eq.s32.totalorder %s1135_s22, 0 }
   0x5   : > { %s61_s25 = sadd.s32 1, %s1123_s19  ;;  %p938_p5 = scmp.ge.s32.totalorder %s1135_s22, 2 }
   0x6   : > { %s1371_s23 = smov (%p26_p0, %s25_s23), 0  ;;  %p70_p3 = por %p69_p2, %p68_p1 }
   0x7   : > { %s58_s24 = ssub.s32 %s1131_s21, %s1371_s23  ;;  %219 = sbr.rel (%p938_p5) target bundleno = 32 (0x20), region = 28 }
   0x8   : > { %p59_p4 = scmp.eq.s32.totalorder %s58_s24, 0 }
   0xa   : > { %s1205_s26 = scalar_select %p59_p4, %s1123_s19, %s61_s25  }
   0xc   : > { %222 = sbr.rel (!%p70_p3) target bundleno = 32 (0x20), region = 32  ;;  %s224_s27 = sand.u32 (%p70_p3), 1, %s1123_s19  }
   0xd   : > { %s989_s28 = sshll.u32 (%p70_p3), %s1131_s21, 4  ;;  %s939_s29 = sshll.u32 (%p70_p3), %s224_s27, 8 }
   0xe   : > { %s1213_s7 = scalar_lea.vmem (%p70_p3), %s1361_s1, %s989_s28  ;;  %s1218_s8 = scalar_lea.vmem (%p70_p3), [#allocation6], %s939_s29 }
   0xf   : > { %v242_v0 = vld [vmem:[%s1213_s7] sm:$0xff] (%p70_p3)  ;;  %v244_v1 = vld [vmem:[%s1213_s7 + $0x8] sm:$0xff] (%p70_p3) }
  0x10   : > { %v246_v2 = vld [vmem:[%s1213_s7 + $0x20] sm:$0xff] (%p70_p3)  ;;  %243 = vst [vmem:[%s1218_s8] sm:$0xff] (%p70_p3), %v242_v0  ;;  %245 = vst [vmem:[%s1218_s8 + $0x8] sm:$0xff] (%p70_p3), %v244_v1  ;;  %v248_v3 = vld [vmem:[%s1213_s7 + $0x28] sm:$0xff] (%p70_p3) }
  0x11   : > { %247 = vst [vmem:[%s1218_s8 + $0x10] sm:$0xff] %v246_v2  ;;  %v250_v4 = vld [vmem:[%s1213_s7 + $0x40] sm:$0xff]  ;;  %v252_v5 = vld [vmem:[%s1213_s7 + $0x48] sm:$0xff]  ;;  %249 = vst [vmem:[%s1218_s8 + $0x18] sm:$0xff] %v248_v3 }
  0x12   : > { %251 = vst [vmem:[%s1218_s8 + $0x20] sm:$0xff] %v250_v4  ;;  %253 = vst [vmem:[%s1218_s8 + $0x28] sm:$0xff] %v252_v5  ;;  %v254_v6 = vld [vmem:[%s1213_s7 + $0x60] sm:$0xff]  ;;  %v256_v7 = vld [vmem:[%s1213_s7 + $0x68] sm:$0xff] }
  0x13   : > { %v258_v8 = vld [vmem:[%s1213_s7 + $0x80] sm:$0xff]  ;;  %255 = vst [vmem:[%s1218_s8 + $0x30] sm:$0xff] %v254_v6  ;;  %257 = vst [vmem:[%s1218_s8 + $0x38] sm:$0xff] %v256_v7  ;;  %v260_v9 = vld [vmem:[%s1213_s7 + $0x88] sm:$0xff] }
  0x14   : > { %259 = vst [vmem:[%s1218_s8 + $0x40] sm:$0xff] %v258_v8  ;;  %v262_v10 = vld [vmem:[%s1213_s7 + $0xa0] sm:$0xff]  ;;  %v264_v11 = vld [vmem:[%s1213_s7 + $0xa8] sm:$0xff]  ;;  %261 = vst [vmem:[%s1218_s8 + $0x48] sm:$0xff] %v260_v9 }
  0x15   : > { %263 = vst [vmem:[%s1218_s8 + $0x50] sm:$0xff] %v262_v10  ;;  %265 = vst [vmem:[%s1218_s8 + $0x58] sm:$0xff] %v264_v11  ;;  %v266_v12 = vld [vmem:[%s1213_s7 + $0xc0] sm:$0xff]  ;;  %v268_v13 = vld [vmem:[%s1213_s7 + $0xc8] sm:$0xff] }
  0x16   : > { %v270_v14 = vld [vmem:[%s1213_s7 + $0xe0] sm:$0xff]  ;;  %267 = vst [vmem:[%s1218_s8 + $0x60] sm:$0xff] %v266_v12  ;;  %269 = vst [vmem:[%s1218_s8 + $0x68] sm:$0xff] %v268_v13  ;;  %v272_v15 = vld [vmem:[%s1213_s7 + $0xe8] sm:$0xff] }
  0x17   : > { %271 = vst [vmem:[%s1218_s8 + $0x70] sm:$0xff] %v270_v14  ;;  %v274_v16 = vld [vmem:[%s1213_s7 + $0x100] sm:$0xff]  ;;  %v276_v17 = vld [vmem:[%s1213_s7 + $0x108] sm:$0xff]  ;;  %273 = vst [vmem:[%s1218_s8 + $0x78] sm:$0xff] %v272_v15 }
  0x18   : > { %275 = vst [vmem:[%s1218_s8 + $0x80] sm:$0xff] %v274_v16  ;;  %277 = vst [vmem:[%s1218_s8 + $0x88] sm:$0xff] %v276_v17  ;;  %v278_v18 = vld [vmem:[%s1213_s7 + $0x120] sm:$0xff]  ;;  %v280_v19 = vld [vmem:[%s1213_s7 + $0x128] sm:$0xff] }
  0x19   : > { %v282_v20 = vld [vmem:[%s1213_s7 + $0x140] sm:$0xff]  ;;  %279 = vst [vmem:[%s1218_s8 + $0x90] sm:$0xff] %v278_v18  ;;  %281 = vst [vmem:[%s1218_s8 + $0x98] sm:$0xff] %v280_v19  ;;  %v284_v21 = vld [vmem:[%s1213_s7 + $0x148] sm:$0xff] }
  0x1a   : > { %283 = vst [vmem:[%s1218_s8 + $0xa0] sm:$0xff] %v282_v20  ;;  %v286_v22 = vld [vmem:[%s1213_s7 + $0x160] sm:$0xff]  ;;  %v288_v23 = vld [vmem:[%s1213_s7 + $0x168] sm:$0xff]  ;;  %285 = vst [vmem:[%s1218_s8 + $0xa8] sm:$0xff] %v284_v21 }
  0x1b   : > { %287 = vst [vmem:[%s1218_s8 + $0xb0] sm:$0xff] %v286_v22  ;;  %289 = vst [vmem:[%s1218_s8 + $0xb8] sm:$0xff] %v288_v23  ;;  %v290_v24 = vld [vmem:[%s1213_s7 + $0x180] sm:$0xff]  ;;  %v292_v25 = vld [vmem:[%s1213_s7 + $0x188] sm:$0xff] }
  0x1c   : > { %v294_v26 = vld [vmem:[%s1213_s7 + $0x1a0] sm:$0xff]  ;;  %291 = vst [vmem:[%s1218_s8 + $0xc0] sm:$0xff] %v290_v24  ;;  %293 = vst [vmem:[%s1218_s8 + $0xc8] sm:$0xff] %v292_v25  ;;  %v296_v27 = vld [vmem:[%s1213_s7 + $0x1a8] sm:$0xff] }
  0x1d   : > { %295 = vst [vmem:[%s1218_s8 + $0xd0] sm:$0xff] %v294_v26  ;;  %v298_v28 = vld [vmem:[%s1213_s7 + $0x1c0] sm:$0xff]  ;;  %v300_v29 = vld [vmem:[%s1213_s7 + $0x1c8] sm:$0xff]  ;;  %297 = vst [vmem:[%s1218_s8 + $0xd8] sm:$0xff] %v296_v27 }
  0x1e   : > { %299 = vst [vmem:[%s1218_s8 + $0xe0] sm:$0xff] %v298_v28  ;;  %301 = vst [vmem:[%s1218_s8 + $0xe8] sm:$0xff] %v300_v29  ;;  %v302_v30 = vld [vmem:[%s1213_s7 + $0x1e0] sm:$0xff]  ;;  %v304_v31 = vld [vmem:[%s1213_s7 + $0x1e8] sm:$0xff] }
  0x1f   : > { %303 = vst [vmem:[%s1218_s8 + $0xf0] sm:$0xff] %v302_v30  ;;  %305 = vst [vmem:[%s1218_s8 + $0xf8] sm:$0xff] %v304_v31 }
  0x20 PF: > { %p942_p6 = scmp.ge.s32.totalorder %s1135_s22, 1  ;;  %p310_p7 = scmp.lt.s32.totalorder %s1135_s22, 3 }
  0x22   : > { %p311_p8 = pnand %p942_p6, %p310_p7 }
  0x23   : > { %s317_s9 = sand.u32 (!%p311_p8), 1, %s1119_s18   ;;  %p944_p9 = scmp.ne.s32.totalorder (!%p311_p8), %s1127_s20, 0 }
  0x24   : > { %314 = sbr.rel (%p311_p8) target bundleno = 1050 (0x41a), region = 55  ;;  %s943_s10 = sshll.u32 (!%p311_p8), %s317_s9, 8 }
  0x25   : > { %s1284_s11 = scalar_lea.vmem (!%p311_p8), [#allocation6], %s943_s10 }
  0x29   : > { %384 = sbr.rel (%p944_p9) target bundleno = 348 (0x15c), region = 63 }
  0x2e   : > { %v385_v32 = vld [vmem:[%s1360_s0] sm:$0xff]  ;;  %vm400_vm0 = vcmask 7168   ;;  %v1137_v34 = vmov -inf   ;;  %v1138_v35 = vmov 0.0  }
  0x2f   : > { %v386_v33 = vmul.f32 %v385_v32, %v385_v32  ;;  %402 = vst.msk [vmem:[#allocation4] sm:$0xff] %vm400_vm0, %v1137_v34  ;;  %403 = vst.msk [vmem:[#allocation5] sm:$0xff] %vm400_vm0, %v1138_v35  ;;  %v394_v39 = vld [vmem:[%s1362_s2] sm:$0xff] }
  0x31   : > { %387 = vadd.xlane.f32.xlu0 %v386_v33 }
  0xba   : > { %v388_v36 = vpop.xlane.xlu0 %387 }
  0xbb   : > { %v389_v37 = vmax.f32 %v388_v36, 1e-24 }
  0xbd   : > { %1033 = vrsqrt.f32 %v389_v37 }
  0xca   : > { %v1034_v38 = vpop.eup %1033 }
  0xcb   : > { %v391_v40 = vmul.f32 %v1034_v38, %v385_v32 }
  0xcd   : > { %v395_v41 = vmul.f32 %v394_v39, %v391_v40  ;;  %v392_v42 = vpack.c.bf16 %v391_v40, %v391_v40 }
  0xcf   : > { %396 = vadd.xlane.f32.xlu0 %v395_v41  ;;  %393 = vst [vmem:[#allocation2] sm:$0xf] %v392_v42 }
 0x158   : > { %v397_v43 = vpop.xlane.xlu0 %396 }
 0x159   : > { %v945_v44 = vclamps-f32 %v397_v43, 1.0 }
 0x15b   : > { %401 = vst.msk [vmem:[#allocation3] sm:$0xff] %vm400_vm0, %v945_v44 }
 0x15c PF: > { %v1037_v45 = vld [vmem:[%s1284_s11 + $0xe4] ss:$16 sps:$4 sm:$0xff]   ;;  %v1039_v46 = vld [vmem:[%s1284_s11 + $0xec] ss:$16 sps:$4 sm:$0xff]   ;;  %v1139_v47 = vmov 0   ;;  %v689_v18 = vlaneseq  ;;  %s983_s18 = sshll.u32 %s1127_s20, 9 }
 0x15d   : > { %629 = vmatprep.mubr.bf16.mxu0 %v1139_v47  ;;  %670 = vmatprep.mubr.bf16.mxu1 %v1139_v47  ;;  %v1041_v48 = vld [vmem:[%s1284_s11 + $0xe0] ss:$16 sps:$4 sm:$0xff]   ;;  %v1042_v49 = vld [vmem:[%s1284_s11 + $0xe8] ss:$16 sps:$4 sm:$0xff]   ;;  %v1043_v50 = vld [vmem:[%s1284_s11 + $0xc4] ss:$16 sps:$4 sm:$0xff]   ;;  %v695_v26 = vstv %s983_s18 }
 0x15e   : > { %597 = vmatprep.subr.bf16.mxu0 %v1037_v45  ;;  %1035 = vset.pattern.permute.xlu0 %v1139_v47  ;;  %v1045_v51 = vld [vmem:[%s1284_s11 + $0xcc] ss:$16 sps:$4 sm:$0xff]   ;;  %v1047_v52 = vld [vmem:[%s1284_s11 + $0xc0] ss:$16 sps:$4 sm:$0xff]   ;;  %v1048_v53 = vld [vmem:[%s1284_s11 + $0xc8] ss:$16 sps:$4 sm:$0xff]  }
 0x15f   : > { %638 = vmatprep.subr.bf16.mxu1 %v1039_v46  ;;  %1036 = vset.pattern.permute.xlu1 %v1139_v47  ;;  %v1049_v54 = vld [vmem:[%s1284_s11 + $0xa4] ss:$16 sps:$4 sm:$0xff]   ;;  %v1051_v55 = vld [vmem:[%s1284_s11 + $0xac] ss:$16 sps:$4 sm:$0xff]   ;;  %v1053_v56 = vld [vmem:[%s1284_s11 + $0xa0] ss:$16 sps:$4 sm:$0xff]  }
 0x160   : > { %598 = vmatpush1.bf16.msra.mxu0 %v1041_v48  ;;  %639 = vmatpush1.bf16.msra.mxu1 %v1042_v49  ;;  %v1054_v57 = vld [vmem:[%s1284_s11 + $0xa8] ss:$16 sps:$4 sm:$0xff]   ;;  %v1055_v58 = vld [vmem:[%s1284_s11 + $0x84] ss:$16 sps:$4 sm:$0xff]   ;;  %v1057_v59 = vld [vmem:[%s1284_s11 + $0x8c] ss:$16 sps:$4 sm:$0xff]  }
 0x161   : > { %599 = vmatprep.subr.bf16.mxu0 %v1043_v50  ;;  %640 = vmatprep.subr.bf16.mxu1 %v1045_v51  ;;  %v1059_v60 = vld [vmem:[%s1284_s11 + $0x80] ss:$16 sps:$4 sm:$0xff]   ;;  %v1060_v61 = vld [vmem:[%s1284_s11 + $0x88] ss:$16 sps:$4 sm:$0xff]   ;;  %v1061_v62 = vld [vmem:[%s1284_s11 + $0x64] ss:$16 sps:$4 sm:$0xff]  }
 0x162   : > { %v1063_v63 = vld [vmem:[%s1284_s11 + $0x6c] ss:$16 sps:$4 sm:$0xff]   ;;  %v1065_v0 = vld [vmem:[%s1284_s11 + $0x60] ss:$16 sps:$4 sm:$0xff]   ;;  %v1066_v1 = vld [vmem:[%s1284_s11 + $0x68] ss:$16 sps:$4 sm:$0xff]  }
 0x163   : > { %v1067_v2 = vld [vmem:[%s1284_s11 + $0x44] ss:$16 sps:$4 sm:$0xff]   ;;  %v1069_v3 = vld [vmem:[%s1284_s11 + $0x4c] ss:$16 sps:$4 sm:$0xff]   ;;  %v1071_v4 = vld [vmem:[%s1284_s11 + $0x40] ss:$16 sps:$4 sm:$0xff]  }
 0x164   : > { %600 = vmatpush1.bf16.msra.mxu0 %v1047_v52  ;;  %641 = vmatpush1.bf16.msra.mxu1 %v1048_v53  ;;  %v1072_v5 = vld [vmem:[%s1284_s11 + $0x48] ss:$16 sps:$4 sm:$0xff]   ;;  %v1073_v6 = vld [vmem:[%s1284_s11 + $0x24] ss:$16 sps:$4 sm:$0xff]   ;;  %v1075_v7 = vld [vmem:[%s1284_s11 + $0x2c] ss:$16 sps:$4 sm:$0xff]  }
 0x165   : > { %601 = vmatprep.subr.bf16.mxu0 %v1049_v54  ;;  %642 = vmatprep.subr.bf16.mxu1 %v1051_v55  ;;  %v687_v8 = vld [vmem:[#allocation3] sm:$0xff]  ;;  %v1077_v10 = vld [vmem:[%s1284_s11 + $0x20] ss:$16 sps:$4 sm:$0xff]   ;;  %v1079_v12 = vld [vmem:[%s1284_s11 + $0x4] ss:$16 sps:$4 sm:$0xff]   ;;  %v690_v19 = vand.u32 127, %v689_v18 }
 0x166   : > { %v982_v9 = vadd.f32 -0.35, %v687_v8  ;;  %v1078_v11 = vld [vmem:[%s1284_s11 + $0x28] ss:$16 sps:$4 sm:$0xff]   ;;  %v1081_v13 = vld [vmem:[%s1284_s11 + $0xc] ss:$16 sps:$4 sm:$0xff]  }
 0x167   : > { %v700_v14 = vld [vmem:[%s1363_s3] sm:$0xff]  ;;  %v1083_v15 = vld [vmem:[%s1284_s11] ss:$16 sps:$4 sm:$0xff]   ;;  %v692_v21 = vadd.s32 256, %v690_v19  ;;  %v691_v24 = vadd.s32 128, %v690_v19  ;;  %v693_v25 = vadd.s32 384, %v690_v19  ;;  %v696_v33 = vadd.s32 %v695_v26, %v690_v19 }
 0x168   : > { %602 = vmatpush1.bf16.msra.mxu0 %v1053_v56  ;;  %643 = vmatpush1.bf16.msra.mxu1 %v1054_v57  ;;  %v1084_v16 = vld [vmem:[%s1284_s11 + $0x8] ss:$16 sps:$4 sm:$0xff]   ;;  %v404_v17 = vld [vmem:[#allocation2] sm:$0xf]  ;;  %vm780_vm13 = vcmask 7168   ;;  %p984_p10 = scmp.ne.s32.totalorder %s1127_s20, 1 }
 0x169   : > { %603 = vmatprep.subr.bf16.mxu0 %v1055_v58  ;;  %644 = vmatprep.subr.bf16.mxu1 %v1057_v59  ;;  %v698_v34 = vadd.s32 %v695_v26, %v692_v21  ;;  %v697_v38 = vadd.s32 %v695_v26, %v691_v24  ;;  %v699_v39 = vadd.s32 %v695_v26, %v693_v25  ;;  %vm737_vm1 = vcmp.lt.s32.totalorder %v696_v33, 1000 }
 0x16a   : > { %718 = vperm.xlu0 %1035, %v982_v9  }
 0x16b   : > { %vm739_vm2 = vcmp.lt.s32.totalorder %v698_v34, 1000  ;;  %vm738_vm11 = vcmp.lt.s32.totalorder %v697_v38, 1000  ;;  %vm740_vm12 = vcmp.lt.s32.totalorder %v699_v39, 1000 }
 0x16c   : > { %604 = vmatpush1.bf16.msra.mxu0 %v1059_v60  ;;  %645 = vmatpush1.bf16.msra.mxu1 %v1060_v61 }
 0x16d   : > { %605 = vmatprep.subr.bf16.mxu0 %v1061_v62  ;;  %646 = vmatprep.subr.bf16.mxu1 %v1063_v63 }
 0x16e   : > { %702 = vperm.xlu0 %1035, %v700_v14  }
 0x170   : > { %606 = vmatpush1.bf16.msra.mxu0 %v1065_v0  ;;  %647 = vmatpush1.bf16.msra.mxu1 %v1066_v1 }
 0x171   : > { %607 = vmatprep.subr.bf16.mxu0 %v1067_v2  ;;  %648 = vmatprep.subr.bf16.mxu1 %v1069_v3 }
 0x174   : > { %608 = vmatpush1.bf16.msra.mxu0 %v1071_v4  ;;  %649 = vmatpush1.bf16.msra.mxu1 %v1072_v5  ;;  %v745_v5 = vld [vmem:[#allocation4] sm:$0xff] }
 0x175   : > { %609 = vmatprep.subr.bf16.mxu0 %v1073_v6  ;;  %650 = vmatprep.subr.bf16.mxu1 %v1075_v7 }
 0x178   : > { %610 = vmatpush1.bf16.msra.mxu0 %v1077_v10  ;;  %651 = vmatpush1.bf16.msra.mxu1 %v1078_v11 }
 0x179   : > { %611 = vmatprep.subr.bf16.mxu0 %v1079_v12  ;;  %652 = vmatprep.subr.bf16.mxu1 %v1081_v13 }
 0x17c   : > { %612 = vmatpush1.bf16.msra.mxu0 %v1083_v15  ;;  %653 = vmatpush1.bf16.msra.mxu1 %v1084_v16 }
 0x17f   : > { %630 = vmatmul.mubr.bf16.vlgmr.msra.gmra.mxu0 %v404_v17  ;;  %671 = vmatmul.mubr.bf16.vlgmr.msra.gmra.mxu1 %v404_v17 }
 0x1e5   : > { %v719_v20 = vpop.permute.xlu0 %718 }
 0x1e9   : > { %v703_v35 = vpop.permute.xlu0 %702 }
 0x1ea   : > { %vm704_vm5 = vcmp.eq.s32.totalorder %v696_v33, %v703_v35  ;;  %vm706_vm6 = vcmp.eq.s32.totalorder %v698_v34, %v703_v35  ;;  %vm705_vm9 = vcmp.eq.s32.totalorder %v697_v38, %v703_v35  ;;  %vm707_vm10 = vcmp.eq.s32.totalorder %v699_v39, %v703_v35 }
 0x23f   : > { %v631_v22 = vpop.f32.mrf.mxu0  ;;  %v672_v23 = vpop.f32.mrf.mxu1 }
 0x240   : > { %v978_v27 = vclamps-f32 %v631_v22, 1.0  ;;  %v980_v28 = vclamps-f32 %v672_v23, 1.0 }
 0x241   : > { %v633_v29 = vpop.f32.mrf.mxu0  ;;  %v674_v30 = vpop.f32.mrf.mxu1 }
 0x242   : > { %v708_v31 = vmul.f32 1.2, %v978_v27  ;;  %v710_v32 = vmul.f32 1.2, %v980_v28  ;;  %v979_v36 = vclamps-f32 %v633_v29, 1.0  ;;  %v981_v37 = vclamps-f32 %v674_v30, 1.0 }
 0x243   : > { %v635_v40 = vpop.f32.mrf.mxu0  ;;  %v676_v41 = vpop.f32.mrf.mxu1  ;;  %vm721_vm3 = vcmp.gt.f32.partialorder %v978_v27, %v719_v20  ;;  %vm723_vm4 = vcmp.gt.f32.partialorder %v980_v28, %v719_v20 }
 0x244   : > { %v712_v42 = vadd.f32 0.2, %v708_v31  ;;  %v714_v43 = vadd.f32 0.2, %v710_v32  ;;  %v709_v44 = vmul.f32 1.2, %v979_v36  ;;  %vm722_vm7 = vcmp.gt.f32.partialorder %v979_v36, %v719_v20 }
 0x245   : > { %v711_v45 = vmul.f32 1.2, %v981_v37  ;;  %v636_v46 = vpop.f32.mrf.mxu0  ;;  %v677_v47 = vpop.f32.mrf.mxu1  ;;  %vm724_vm8 = vcmp.gt.f32.partialorder %v981_v37, %v719_v20 }
 0x246   : > { %v725_v48 = vsel %vm721_vm3, %v712_v42, %v978_v27  ;;  %v727_v49 = vsel %vm723_vm4, %v714_v43, %v980_v28  ;;  %v713_v50 = vadd.f32 0.2, %v709_v44  ;;  %v755_v27 = vld [vmem:[#allocation5] sm:$0xff] }
 0x247   : > { %v715_v51 = vadd.f32 0.2, %v711_v45  ;;  %v729_v52 = vsel %vm704_vm5, %v719_v20, %v725_v48  ;;  %v731_v53 = vsel %vm706_vm6, %v719_v20, %v727_v49 }
 0x248   : > { %v733_v54 = vmul.f32 32.0, %v729_v52  ;;  %v726_v55 = vsel %vm722_vm7, %v713_v50, %v979_v36  ;;  %v735_v57 = vmul.f32 32.0, %v731_v53 }
 0x249   : > { %v728_v56 = vsel %vm724_vm8, %v715_v51, %v981_v37  ;;  %v730_v58 = vsel %vm705_vm9, %v719_v20, %v726_v55 }
 0x24a   : > { %v732_v59 = vsel %vm707_vm10, %v719_v20, %v728_v56  ;;  %v734_v60 = vmul.f32 32.0, %v730_v58  ;;  %v741_v62 = vsel %vm737_vm1, %v733_v54, -1e+30  ;;  %v743_v0 = vsel %vm739_vm2, %v735_v57, -1e+30 }
 0x24b   : > { %v736_v61 = vmul.f32 32.0, %v732_v59 }
 0x24c   : > { %v742_v63 = vsel %vm738_vm11, %v734_v60, -1e+30 }
 0x24d   : > { %v744_v1 = vsel %vm740_vm12, %v736_v61, -1e+30  ;;  %v746_v2 = vmax.f32 %v741_v62, %v742_v63 }
 0x24e   : > { %v747_v3 = vmax.f32 %v743_v0, %v744_v1 }
 0x250   : > { %v748_v4 = vmax.f32 %v746_v2, %v747_v3 }
 0x252   : > { %749 = vmax.xlane.f32.xlu1 %v748_v4 }
 0x2db   : > { %v750_v6 = vpop.xlane.xlu1 %749 }
 0x2dc   : > { %v751_v7 = vmax.f32 %v745_v5, %v750_v6 }
 0x2de   : > { %v752_v8 = vsub.f32 %v745_v5, %v751_v7  ;;  %782 = vst.msk [vmem:[#allocation4] sm:$0xff] %vm780_vm13, %v751_v7  ;;  %759 = vperm.xlu1 %1036, %v751_v7  }
 0x2e0   : > { %v753_v25 = vmul.f32 1.442695, %v752_v8 }
 0x359   : > { %v760_v9 = vpop.permute.xlu1 %759 }
 0x35a   : > { %v762_v10 = vsub.f32 %v741_v62, %v760_v9  ;;  %v763_v11 = vsub.f32 %v742_v63, %v760_v9  ;;  %v764_v12 = vsub.f32 %v743_v0, %v760_v9  ;;  %v765_v13 = vsub.f32 %v744_v1, %v760_v9 }
 0x35c   : > { %v766_v14 = vmul.f32 1.442695, %v762_v10  ;;  %v768_v15 = vmul.f32 1.442695, %v763_v11  ;;  %v770_v16 = vmul.f32 1.442695, %v764_v12 }
 0x35d   : > { %v772_v17 = vmul.f32 1.442695, %v765_v13 }
 0x35e   : > { %1085 = vpow2.f32 %v766_v14 }
 0x35f   : > { %1087 = vpow2.f32 %v768_v15 }
 0x360   : > { %1089 = vpow2.f32 %v770_v16 }
 0x361   : > { %1091 = vpow2.f32 %v772_v17 }
 0x362   : > { %1093 = vpow2.f32 %v753_v25 }
 0x36b   : > { %v1086_v18 = vpop.eup %1085 }
 0x36c   : > { %v1088_v19 = vpop.eup %1087 }
 0x36d   : > { %v774_v20 = vadd.f32 %v1088_v19, %v1086_v18  ;;  %v1090_v21 = vpop.eup %1089 }
 0x36e   : > { %v1092_v23 = vpop.eup %1091 }
 0x36f   : > { %v775_v22 = vadd.f32 %v1090_v21, %v774_v20  ;;  %v1094_v26 = vpop.eup %1093 }
 0x370   : > { %v756_v28 = vmul.f32 %v1094_v26, %v755_v27 }
 0x371   : > { %v776_v24 = vadd.f32 %v1092_v23, %v775_v22 }
 0x373   : > { %777 = vadd.xlane.f32.xlu0 %v776_v24 }
 0x3fb   : > { %786 = sbr.rel (%p984_p10) target bundleno = 1050 (0x41a), region = 67 }
 0x3fc   : > { %v778_v29 = vpop.xlane.xlu0 %777 }
 0x3fd   : > { %v779_v30 = vadd.f32 %v778_v29, %v756_v28 }
 0x3ff   : > { %781 = vst.msk [vmem:[#allocation5] sm:$0xff] %vm780_vm13, %v779_v30 }
 0x400   : > { %v793_v32 = vld [vmem:[#allocation3] sm:$0xff]  ;;  %v787_v34 = vld [vmem:[#allocation4] sm:$0xff] }
 0x401   : > { %794 = vst.msk [vmem:[%s1365_s5] sm:$0xff] %vm780_vm13, %v793_v32 }
 0x406   : > { %v788_v31 = vld [vmem:[#allocation5] sm:$0xff] }
 0x407   : > { %1095 = vlog2.f32 %v788_v31 }
 0x414   : > { %v1096_v33 = vpop.eup %1095 }
 0x415   : > { %v790_v35 = vmul.f32 0.6931472, %v1096_v33 }
 0x417   : > { %v791_v36 = vadd.f32 %v790_v35, %v787_v34 }
 0x419   : > { %792 = vst.msk [vmem:[%s1364_s4] sm:$0xff] %vm780_vm13, %v791_v36 }
 0x41a PF: > { %s16_s22 = sadd.s32 1, %s1135_s22   ;;  %s1366_s18 = smov %s1123_s19 }
 0x41b   : > { %p13_p11 = scmp.ge.s32.totalorder %s16_s22, 4   ;;  %s1367_s19 = smov %s1205_s26 }
 0x41c   : > { %s1368_s20 = smov %s1131_s21  ;;  %s1369_s21 = smov %s1371_s23 }
 0x41d   :  { %15 = sbr.rel (!%p13_p11) target bundleno = 3 (0x3), region = 123 }

</bundles_post_ra>
